<compile_context>
chip_gen: v5e
topology: v5e:2x2
jax: 0.10.0
libtpu: 0.0.40
codegen_flags: <defaults>
</compile_context>

<pallas_src>
import functools

import jax
import jax.numpy as jnp
from jax import lax
from jax.experimental import pallas as pl
from jax.experimental.pallas import tpu as pltpu

_HALO_ROWS = 8   # one sublane tile; supports kernel_size - 1 <= 8
_LANES = 128     # lane width: output channels padded to a multiple of this


def _round_up(x, m):
    return (x + m - 1) // m * m


def _conv1d_kernel(x_ref, halo_ref, w_ref, b_ref, o_ref, *, K, pad_l, tile_t, c_out_p):
    """One (batch, time-tile) grid step.

    x_ref   : (tile_t, C_in)     current time tile (channels-last = lane dim)
    halo_ref: (8, C_in)          rows [0:pad_l] precede the tile, rows [pad_l:K-1]
                                 follow it (zeros at the sequence edges)
    w_ref   : (C_in, K*c_out_p)  tap k occupies lanes [k*c_out_p : (k+1)*c_out_p]
    b_ref   : (1, c_out_p)       bias (f32, already padded to c_out_p lanes)
    o_ref   : (tile_t, c_out_p)  output tile
    """
    x = x_ref[...]                          # native dtype straight into the MXU
    w = w_ref[...]

    # One wide MXU matmul: every tap's product at once.
    p = jnp.dot(x, w, preferred_element_type=jnp.float32)           # (tile_t, K*c_out_p)

    if K > 1:
        # Tiny halo matmul: per-tap contributions of the 8 halo rows.
        ph = jnp.dot(halo_ref[...], w, preferred_element_type=jnp.float32)  # (8, K*c_out_p)
        row8 = lax.broadcasted_iota(jnp.int32, (_HALO_ROWS, 1), 0)

    acc = b_ref[...]                        # (1, c_out_p) f32 -> broadcasts over rows
    top = None                              # f32 correction for rows [0, 8)
    bot = None                              # f32 correction for rows [tile_t-8, tile_t)

    for k in range(K):                      # static tap loop
        s = k - pad_l                       # time shift of this tap
        pk = p[:, k * c_out_p:(k + 1) * c_out_p]                    # lane-aligned slice
        # rolled[i] = pk[(i + s) % tile_t]  (XLU sublane rotate; commutes with matmul)
        rk = pk if s == 0 else pltpu.roll(pk, shift=(-s) % tile_t, axis=0)
        acc = acc + rk
        if s == 0:
            continue
        # Only the first/last sublane-aligned 8-row block can contain wrapped rows
        # (|s| <= 4 <= 8): replace them with the matching halo contribution.
        phk = ph[:, k * c_out_p:(k + 1) * c_out_p]
        hro = pltpu.roll(phk, shift=(-(pad_l + s)) % _HALO_ROWS, axis=0)
        if s < 0:   # left edge: rows i < -s read before the tile
            fix = jnp.where(row8 + s < 0, hro - rk[:_HALO_ROWS], 0.0)
            top = fix if top is None else top + fix
        else:       # right edge: rows i >= tile_t - s read past the tile
            fix = jnp.where(row8 >= _HALO_ROWS - s, hro - rk[tile_t - _HALO_ROWS:], 0.0)
            bot = fix if bot is None else bot + fix

    if top is None and bot is None:         # K == 1: no boundaries to fix
        o_ref[...] = acc.astype(o_ref.dtype)
        return

    t8 = acc[:_HALO_ROWS]
    if top is not None:
        t8 = t8 + top
    b8 = acc[tile_t - _HALO_ROWS:]
    if bot is not None:
        b8 = b8 + bot
    # Disjoint, sublane-aligned stores: 8-row edge blocks + untouched middle.
    o_ref[0:_HALO_ROWS, :] = t8.astype(o_ref.dtype)
    if tile_t > 2 * _HALO_ROWS:
        o_ref[_HALO_ROWS:tile_t - _HALO_ROWS, :] = (
            acc[_HALO_ROWS:tile_t - _HALO_ROWS].astype(o_ref.dtype))
    o_ref[tile_t - _HALO_ROWS:tile_t, :] = b8.astype(o_ref.dtype)


def conv1d_same(x, weight, bias, *, tile_t=None):
    """x: (B, T, C_in), weight: (C_out, C_in, K), bias: (C_out,) -> (B, T, C_out)."""
    B, T, C_in = x.shape
    C_out, C_in_w, K = weight.shape
    assert C_in_w == C_in
    if K - 1 > _HALO_ROWS:
        # TODO(synk): support kernel_size > 9 (halo wider than one sublane tile).
        raise NotImplementedError("conv1d_same supports kernel_size <= 9")

    # PyTorch 'same' padding (stride=1, dilation=1): left = (K-1)//2, right = rest.
    pad_l = (K - 1) // 2
    pad_r = (K - 1) - pad_l

    # Lane-dense output: pad C_out to a multiple of 128 (unmasked stores), slice later.
    c_out_p = _round_up(max(C_out, _LANES), _LANES)

    # Time tile: multiple of 8, >= 16, target 512. For B == 1 cap it so there are
    # >= 2 time tiles (both v7x TensorCores get work and the pipeline has > 1 step).
    if tile_t is None:
        tile_t = min(512, _round_up(T, 8))
        if B == 1:
            tile_t = min(tile_t, max(16, _round_up(pl.cdiv(T, 2), 8)))
        tile_t = max(tile_t, 16)
    assert tile_t % 8 == 0 and tile_t >= 16, "tile_t must be a multiple of 8 and >= 16"

    T_pad = _round_up(T, tile_t)
    if T_pad != T:
        # Zero rows beyond T behave exactly like 'same' zero padding; sliced off below.
        x = jnp.pad(x, ((0, 0), (0, T_pad - T), (0, 0)))
    nT = T_pad // tile_t

    # Tiny per-tile halo array (B, nT, 8, C_in): the pad_l rows preceding and the
    # pad_r rows following each tile, zero-filled at the sequence edges.
    xt = x.reshape(B, nT, tile_t, C_in)
    zl = jnp.zeros((B, 1, pad_l, C_in), x.dtype)
    zr = jnp.zeros((B, 1, pad_r, C_in), x.dtype)
    left = jnp.concatenate([zl, xt[:, :-1, tile_t - pad_l:, :]], axis=1)
    right = jnp.concatenate([xt[:, 1:, :pad_r, :], zr], axis=1)
    fill = jnp.zeros((B, nT, _HALO_ROWS - (K - 1), C_in), x.dtype)
    halo = jnp.concatenate([left, right, fill], axis=2)            # (B, nT, 8, C_in)

    # (C_out, C_in, K) -> wide (C_in, K*c_out_p); tap k at lanes [k*c_out_p:(k+1)*c_out_p].
    # Keep the activations' dtype for the MXU (bf16 stays bf16; accumulation is f32).
    w_kco = jnp.transpose(weight, (2, 1, 0))                       # (K, C_in, C_out)
    if c_out_p != C_out:
        w_kco = jnp.pad(w_kco, ((0, 0), (0, 0), (0, c_out_p - C_out)))
    w_wide = jnp.transpose(w_kco, (1, 0, 2)).reshape(C_in, K * c_out_p).astype(x.dtype)
    b_pad = bias.astype(jnp.float32)
    if c_out_p != C_out:
        b_pad = jnp.pad(b_pad, (0, c_out_p - C_out))
    b_2d = b_pad.reshape(1, c_out_p)

    # Computed VMEM footprint (double-buffered pipeline blocks + resident weights +
    # f32 intermediates) with headroom, instead of a flat 48 MiB (v7x: 64 MiB / TC).
    esz = x.dtype.itemsize
    vmem_est = (2 * (tile_t * C_in + _HALO_ROWS * C_in + tile_t * c_out_p) * esz
                + (C_in * K * c_out_p) * esz + c_out_p * 4
                + (K + 4) * tile_t * c_out_p * 4
                + 2 * _HALO_ROWS * K * c_out_p * 4)
    vmem_limit = int(min(64 * 1024 * 1024,
                         max(16 * 1024 * 1024, vmem_est + (4 << 20))))

    flops = 2 * B * T_pad * K * C_in * c_out_p
    bytes_accessed = int(x.size * esz + halo.size * esz
                         + w_wide.size * esz + b_2d.size * 4
                         + B * T_pad * c_out_p * esz)

    kernel = functools.partial(_conv1d_kernel, K=K, pad_l=pad_l, tile_t=tile_t,
                               c_out_p=c_out_p)
    out = pl.pallas_call(
        kernel,
        out_shape=jax.ShapeDtypeStruct((B, T_pad, c_out_p), x.dtype),
        grid_spec=pltpu.PrefetchScalarGridSpec(
            num_scalar_prefetch=0,
            grid=(B, nT),
            in_specs=[
                pl.BlockSpec((None, tile_t, C_in), lambda b, t: (b, t, 0)),
                pl.BlockSpec((None, None, _HALO_ROWS, C_in), lambda b, t: (b, t, 0, 0)),
                pl.BlockSpec((C_in, K * c_out_p), lambda b, t: (0, 0)),
                pl.BlockSpec((1, c_out_p), lambda b, t: (0, 0)),
            ],
            out_specs=pl.BlockSpec((None, tile_t, c_out_p), lambda b, t: (b, t, 0)),
        ),
        compiler_params=pltpu.CompilerParams(
            dimension_semantics=("parallel", "parallel"),
            vmem_limit_bytes=vmem_limit,
        ),
        cost_estimate=pl.CostEstimate(flops=flops, transcendentals=0,
                                      bytes_accessed=bytes_accessed),
    )(x, halo, w_wide, b_2d)

    if T_pad != T or c_out_p != C_out:
        out = out[:, :T, :C_out]
    return out


class Conv1DPallas:
    """Deterministic-param stand-in for the PyTorch Conv1D module."""

    def __init__(self, in_channels, out_channels, kernel_size, padding="same", key=None):
        del padding  # the module always uses 'same' internally
        if key is None:
            key = jax.random.PRNGKey(0)
        kw, kb = jax.random.split(key)
        fan_in = in_channels * kernel_size
        bound = 1.0 / (fan_in ** 0.5)   # PyTorch Conv1d default init range
        self.weight = jax.random.uniform(
            kw, (out_channels, in_channels, kernel_size),
            minval=-bound, maxval=bound, dtype=jnp.float32)
        self.bias = jax.random.uniform(
            kb, (out_channels,), minval=-bound, maxval=bound, dtype=jnp.float32)

    def __call__(self, x, *, tile_t=None):
        return conv1d_same(x, self.weight, self.bias, tile_t=tile_t)


def _reference(x, weight, bias):
    # lax conv in NCW layout, replicating torch permute -> Conv1d('same') -> permute.
    x_ncw = jnp.transpose(x, (0, 2, 1))
    K = weight.shape[-1]
    pad_l = (K - 1) // 2
    pad_r = (K - 1) - pad_l
    y = jax.lax.conv_general_dilated(
        x_ncw, weight, window_strides=(1,), padding=[(pad_l, pad_r)],
        dimension_numbers=("NCH", "OIH", "NCH"))
    y = y + bias[None, :, None]
    return jnp.transpose(y, (0, 2, 1))


if __name__ == "__main__":
    key = jax.random.PRNGKey(0)
    kx1, kx2, kx3, kp = jax.random.split(key, 4)
    C_in, C_out, K = 4, 8, 3
    module = Conv1DPallas(C_in, C_out, K, padding="same", key=kp)

    # 1) Basic path: B=2, T=16 (single time tile, C_out padded to 128 lanes).
    x1 = jax.random.normal(kx1, (2, 16, C_in), dtype=jnp.float32)
    out1 = jax.block_until_ready(module(x1))
    assert out1.shape == (2, 16, C_out)
    ref1 = _reference(x1, module.weight, module.bias)
    assert jnp.allclose(out1, ref1, atol=1e-4, rtol=1e-4), "mismatch (basic)"

    # 2) B=1, T=32: default tiling picks tile_t=16 -> two time tiles (cross-tile
    #    halo path and the v7x "nT >= 2 for single utterance" heuristic).
    x2 = jax.random.normal(kx2, (1, 32, C_in), dtype=jnp.float32)
    out2 = jax.block_until_ready(module(x2))
    ref2 = _reference(x2, module.weight, module.bias)
    assert jnp.allclose(out2, ref2, atol=1e-4, rtol=1e-4), "mismatch (multi-tile)"

    # 3) Non-tile-aligned T with an explicit tile override (T padding + halo).
    x3 = jax.random.normal(kx3, (2, 20, C_in), dtype=jnp.float32)
    out3 = jax.block_until_ready(module(x3, tile_t=16))
    ref3 = _reference(x3, module.weight, module.bias)
    assert jnp.allclose(out3, ref3, atol=1e-4, rtol=1e-4), "mismatch (ragged T)"

    print("KERNEL_OK")
</pallas_src>

<mosaic_0001>
module attributes {stable_mosaic.version = 11 : i64} {
  func.func @_conv1d_kernel(%arg0: i32, %arg1: i32, %arg2: memref<1x16x4xf32, #tpu.memory_space<vmem>>, %arg3: memref<1x1x8x4xf32, #tpu.memory_space<vmem>>, %arg4: memref<4x384xf32, #tpu.memory_space<vmem>>, %arg5: memref<1x128xf32, #tpu.memory_space<vmem>>, %arg6: memref<1x16x128xf32, #tpu.memory_space<vmem>>) attributes {dimension_semantics = [#tpu.dimension_semantics<parallel>, #tpu.dimension_semantics<parallel>], iteration_bounds = array<i64: 2, 1>, scalar_prefetch = 0 : i64, scratch_operands = 0 : i64, tpu.core_type = #tpu.core_type<tc>, window_params = [{transform_indices = @transform_0, window_bounds = array<i64: 1, 16, 4>}, {transform_indices = @transform_1, window_bounds = array<i64: 1, 1, 8, 4>}, {pipeline_mode = #tpu.pipeline_mode<synchronous>, transform_indices = @transform_2, window_bounds = array<i64: 4, 384>}, {pipeline_mode = #tpu.pipeline_mode<synchronous>, transform_indices = @transform_3, window_bounds = array<i64: 1, 128>}, {transform_indices = @transform_4, window_bounds = array<i64: 1, 16, 128>}]} {
    %c0 = arith.constant 0 : index
    %c0_0 = arith.constant 0 : index
    %c0_1 = arith.constant 0 : index
    %0 = vector.load %arg2[%c0, %c0_0, %c0_1] : memref<1x16x4xf32, #tpu.memory_space<vmem>>, vector<1x16x4xf32>
    %1 = vector.shape_cast %0 : vector<1x16x4xf32> to vector<16x4xf32>
    %c0_2 = arith.constant 0 : index
    %c0_3 = arith.constant 0 : index
    %2 = vector.load %arg4[%c0_2, %c0_3] : memref<4x384xf32, #tpu.memory_space<vmem>>, vector<4x384xf32>
    %cst = arith.constant dense<0.000000e+00> : vector<16x384xf32>
    %3 = tpu.matmul %1, %2, %cst {dimension_numbers = #tpu.dot_dimension_numbers<[1], [0], [0], [1], [0, 0, 1, 1], [], []>} : vector<16x4xf32>, vector<4x384xf32>, vector<16x384xf32> -> vector<16x384xf32>
    %c0_4 = arith.constant 0 : index
    %c0_5 = arith.constant 0 : index
    %c0_6 = arith.constant 0 : index
    %c0_7 = arith.constant 0 : index
    %4 = vector.load %arg3[%c0_4, %c0_5, %c0_6, %c0_7] : memref<1x1x8x4xf32, #tpu.memory_space<vmem>>, vector<1x1x8x4xf32>
    %5 = vector.shape_cast %4 : vector<1x1x8x4xf32> to vector<8x4xf32>
    %cst_8 = arith.constant dense<0.000000e+00> : vector<8x384xf32>
    %6 = tpu.matmul %5, %2, %cst_8 {dimension_numbers = #tpu.dot_dimension_numbers<[1], [0], [0], [1], [0, 0, 1, 1], [], []>} : vector<8x4xf32>, vector<4x384xf32>, vector<8x384xf32> -> vector<8x384xf32>
    %7 = tpu.iota {dimensions = array<i32: 0>} : vector<8x1xi32>
    %c0_9 = arith.constant 0 : index
    %c0_10 = arith.constant 0 : index
    %8 = vector.load %arg5[%c0_9, %c0_10] : memref<1x128xf32, #tpu.memory_space<vmem>>, vector<1x128xf32>
    %9 = vector.extract_strided_slice %3 {offsets = [0, 0], sizes = [16, 128], strides = [1, 1]} : vector<16x384xf32> to vector<16x128xf32>
    %c1_i32 = arith.constant 1 : i32
    %10 = tpu.dynamic_rotate %9 by %c1_i32 dim 0 : vector<16x128xf32>, i32 -> vector<16x128xf32>
    %11 = vector.broadcast %8 : vector<1x128xf32> to vector<16x128xf32>
    %12 = arith.addf %11, %10 : vector<16x128xf32>
    %13 = vector.extract_strided_slice %6 {offsets = [0, 0], sizes = [8, 128], strides = [1, 1]} : vector<8x384xf32> to vector<8x128xf32>
    %c0_i32 = arith.constant 0 : i32
    %14 = tpu.dynamic_rotate %13 by %c0_i32 dim 0 : vector<8x128xf32>, i32 -> vector<8x128xf32>
    %c-1_i32 = arith.constant -1 : i32
    %15 = vector.broadcast %c-1_i32 : i32 to vector<8x1xi32>
    %16 = arith.addi %7, %15 : vector<8x1xi32>
    %c0_i32_11 = arith.constant 0 : i32
    %17 = vector.broadcast %c0_i32_11 : i32 to vector<8x1xi32>
    %18 = arith.cmpi slt, %16, %17 : vector<8x1xi32>
    %19 = vector.extract_strided_slice %10 {offsets = [0, 0], sizes = [8, 128], strides = [1, 1]} : vector<16x128xf32> to vector<8x128xf32>
    %20 = arith.subf %14, %19 : vector<8x128xf32>
    %cst_12 = arith.constant 0.000000e+00 : f32
    %21 = vector.shape_cast %18 : vector<8x1xi1> to vector<8x1xi1>
    %22 = vector.broadcast %21 : vector<8x1xi1> to vector<8x128xi1>
    %23 = vector.broadcast %cst_12 : f32 to vector<8x128xf32>
    %24 = arith.select %22, %20, %23 : vector<8x128xi1>, vector<8x128xf32>
    %25 = vector.extract_strided_slice %3 {offsets = [0, 128], sizes = [16, 128], strides = [1, 1]} : vector<16x384xf32> to vector<16x128xf32>
    %26 = arith.addf %12, %25 : vector<16x128xf32>
    %27 = vector.extract_strided_slice %3 {offsets = [0, 256], sizes = [16, 128], strides = [1, 1]} : vector<16x384xf32> to vector<16x128xf32>
    %c15_i32 = arith.constant 15 : i32
    %28 = tpu.dynamic_rotate %27 by %c15_i32 dim 0 : vector<16x128xf32>, i32 -> vector<16x128xf32>
    %29 = arith.addf %26, %28 : vector<16x128xf32>
    %30 = vector.extract_strided_slice %6 {offsets = [0, 256], sizes = [8, 128], strides = [1, 1]} : vector<8x384xf32> to vector<8x128xf32>
    %c6_i32 = arith.constant 6 : i32
    %31 = tpu.dynamic_rotate %30 by %c6_i32 dim 0 : vector<8x128xf32>, i32 -> vector<8x128xf32>
    %c7_i32 = arith.constant 7 : i32
    %32 = vector.broadcast %c7_i32 : i32 to vector<8x1xi32>
    %33 = arith.cmpi sge, %7, %32 : vector<8x1xi32>
    %34 = vector.extract_strided_slice %28 {offsets = [8, 0], sizes = [8, 128], strides = [1, 1]} : vector<16x128xf32> to vector<8x128xf32>
    %35 = arith.subf %31, %34 : vector<8x128xf32>
    %cst_13 = arith.constant 0.000000e+00 : f32
    %36 = vector.shape_cast %33 : vector<8x1xi1> to vector<8x1xi1>
    %37 = vector.broadcast %36 : vector<8x1xi1> to vector<8x128xi1>
    %38 = vector.broadcast %cst_13 : f32 to vector<8x128xf32>
    %39 = arith.select %37, %35, %38 : vector<8x128xi1>, vector<8x128xf32>
    %40 = vector.extract_strided_slice %29 {offsets = [0, 0], sizes = [8, 128], strides = [1, 1]} : vector<16x128xf32> to vector<8x128xf32>
    %41 = arith.addf %40, %24 : vector<8x128xf32>
    %42 = vector.extract_strided_slice %29 {offsets = [8, 0], sizes = [8, 128], strides = [1, 1]} : vector<16x128xf32> to vector<8x128xf32>
    %43 = arith.addf %42, %39 : vector<8x128xf32>
    %c0_14 = arith.constant 0 : index
    %c0_15 = arith.constant 0 : index
    %c0_16 = arith.constant 0 : index
    %44 = vector.load %arg6[%c0_14, %c0_15, %c0_16] : memref<1x16x128xf32, #tpu.memory_space<vmem>>, vector<1x8x128xf32>
    %45 = vector.shape_cast %44 : vector<1x8x128xf32> to vector<8x128xf32>
    %46 = vector.shape_cast %41 : vector<8x128xf32> to vector<1x8x128xf32>
    tpu.vector_store %arg6[%c0_14, %c0_15, %c0_16], %46 {strides = array<i32>} : memref<1x16x128xf32, #tpu.memory_space<vmem>>, vector<1x8x128xf32>,
    %c0_17 = arith.constant 0 : index
    %c8 = arith.constant 8 : index
    %c0_18 = arith.constant 0 : index
    %47 = vector.load %arg6[%c0_17, %c8, %c0_18] : memref<1x16x128xf32, #tpu.memory_space<vmem>>, vector<1x8x128xf32>
    %48 = vector.shape_cast %47 : vector<1x8x128xf32> to vector<8x128xf32>
    %49 = vector.shape_cast %43 : vector<8x128xf32> to vector<1x8x128xf32>
    tpu.vector_store %arg6[%c0_17, %c8, %c0_18], %49 {strides = array<i32>} : memref<1x16x128xf32, #tpu.memory_space<vmem>>, vector<1x8x128xf32>,
    return
  }
  func.func @transform_0(%arg0: i32, %arg1: i32) -> (i32, i32, i32) {
    %c0_i32 = arith.constant 0 : i32
    %c0_i32_0 = arith.constant 0 : i32
    return %arg0, %arg1, %c0_i32 : i32, i32, i32
  }
  func.func @transform_1(%arg0: i32, %arg1: i32) -> (i32, i32, i32, i32) {
    %c0_i32 = arith.constant 0 : i32
    %c0_i32_0 = arith.constant 0 : i32
    %c0_i32_1 = arith.constant 0 : i32
    return %arg0, %arg1, %c0_i32, %c0_i32_0 : i32, i32, i32, i32
  }
  func.func @transform_2(%arg0: i32, %arg1: i32) -> (i32, i32) {
    %c0_i32 = arith.constant 0 : i32
    %c0_i32_0 = arith.constant 0 : i32
    %c0_i32_1 = arith.constant 0 : i32
    return %c0_i32, %c0_i32_0 : i32, i32
  }
  func.func @transform_3(%arg0: i32, %arg1: i32) -> (i32, i32) {
    %c0_i32 = arith.constant 0 : i32
    %c0_i32_0 = arith.constant 0 : i32
    %c0_i32_1 = arith.constant 0 : i32
    return %c0_i32, %c0_i32_0 : i32, i32
  }
  func.func @transform_4(%arg0: i32, %arg1: i32) -> (i32, i32, i32) {
    %c0_i32 = arith.constant 0 : i32
    %c0_i32_0 = arith.constant 0 : i32
    return %arg0, %arg1, %c0_i32 : i32, i32, i32
  }
}

</mosaic_0001>

<bundles_post_ra>
// kernel: tpu_custom_call.1
= control target key start
LH: loop header
LB: loop body
LE: loop exit
PB: predicated region body
PF: predicated region fallthrough
CT: control target
= control target key end

     0   :  { %9 = vsyncpa [#allocation3], 0  ;;  %s877_s0 = inlined_call_operand.vmem [shape: f32[2,16,4], index: 0, kind: input, shape index: {}]   ;;  %s878_s1 = inlined_call_operand.vmem [shape: f32[2,1,8,4], index: 1, kind: input, shape index: {}]   ;;  %s879_s2 = inlined_call_operand.vmem [shape: f32[4,384], index: 2, kind: input, shape index: {}]   ;;  %s880_s3 = inlined_call_operand.vmem [shape: f32[1,128], index: 3, kind: input, shape index: {}]   ;;  %s881_s4 = inlined_call_operand.hbm [shape: f32[2,16,128], index: 4, kind: output, shape index: {}]  }
   0x1   :  { %11 = vsyncpa [#allocation3 + $0x1], 0  ;;  %s747_s15 = smov 0   ;;  %s749_s16 = smov 0  }
   0x2   :  { %s751_s17 = smov 0   ;;  %s753_s18 = smov 0  }
   0x3   :  { %s755_s19 = smov 0   ;;  %s757_s20 = smov 0  }
   0x4 LB: > { %s553_s21 = sadd.s32 4294967295, %s718_s20   ;;  %s554_s22 = sadd.s32 4294967294, %s718_s20   ;;  %s718_s20 = sphi %s757_s20, %s17_s20   ;;  %s714_s19 = sphi %s755_s19, %s888_s19   ;;  %s710_s18 = sphi %s753_s18, %s887_s18   ;;  %s706_s17 = sphi %s751_s17, %s886_s17   ;;  %s702_s16 = sphi %s749_s16, %s885_s16   ;;  %s698_s15 = sphi %s747_s15, %s884_s15  }
   0x5   : > { %s29_s23 = sadd.s32 1, %s714_s19  ;;  %s136_s24 = sadd.s32 1, %s706_s17 }
   0x6   : > { %p31_p0 = scmp.ge.s32.totalorder %s29_s23, 2  ;;  %p146_p1 = scmp.ne.s32.totalorder %s706_s17, %s702_s16 }
   0x7   : > { %p147_p2 = scmp.eq.s32.totalorder %s553_s21, 1  ;;  %p152_p3 = scmp.ne.s32.totalorder %s702_s16, %s698_s15 }
   0x8   : > { %s890_s23 = smov (%p31_p0, %s29_s23), 0  ;;  %p153_p5 = scmp.eq.s32.totalorder %s554_s22, 1 }
   0x9   : > { %p787_p4 = por %p147_p2, %p146_p1  ;;  %s131_s26 = ssub.s32 %s714_s19, %s890_s23 }
   0xa   : > { %p557_p6 = scmp.ge.s32.totalorder %s718_s20, 1  ;;  %p134_p7 = scmp.eq.s32.totalorder %s131_s26, 0 }
   0xb   : > { %p794_p8 = por %p153_p5, %p152_p3  ;;  %p200_p9 = scmp.lt.s32.totalorder %s718_s20, 3 }
   0xc   : > { %s800_s28 = scalar_select %p134_p7, %s706_s17, %s136_s24  }
   0xd   : > { %p201_p10 = pnand %p557_p6, %p200_p9 }
   0xe   : > { %p238_p11 = scmp.lt.s32.totalorder (!%p201_p10), %s710_s18, 1  ;;  %s234_s26 = sand.u32 (!%p201_p10), 1, %s702_s16  }
   0xf   : > { %204 = sbr.rel (%p201_p10) target bundleno = 191 (0xbf), region = 36  ;;  %s558_s29 = sshll.u32 (!%p201_p10), %s234_s26, 4 }
  0x10   : > { %s581_s30 = sshll.u32 (!%p201_p10), %s710_s18, 4  ;;  %s236_s5 = scalar_lea.vmem (!%p201_p10), [#allocation2], %s558_s29 }
  0x11   : > { %s456_s9 = sshll.u32 (!%p201_p10), %s236_s5, 4  ;;  %s457_s9 = int_to_ptr.vmem [resolvable:$true] %s456_s9 }
  0x14   : > { %v258_v0 = vld [vmem:[%s879_s2 + $0x8] sm:$0xf]  ;;  %v257_v1 = vld [vmem:[%s879_s2] sm:$0xff]  ;;  %s239_s7 = scalar_select %p238_p11, %s710_s18, 1  ;;  %vm274_vm0 = vcmask 1043456   ;;  %vm267_vm1 = vcmask 31744   ;;  %v403_v11 = vlaneseq }
  0x15   : > { %263 = vst [vmem:[#allocation1 + $0x10] ss:$2 sm:$0xff] %v258_v0  ;;  %v639_v16 = vld [vmem:[%s880_s3] ss:$0 sm:$0xff]  ;;  %s442_s18 = scalar_lea.sflag [#allocation3], %s234_s26 }
  0x16   : > { %261 = vst [vmem:[#allocation1] ss:$2 sm:$0xff] %v257_v1  ;;  %s580_s8 = sshll.u32 %s239_s7, 4  ;;  %s561_s12 = sshll.u32 %s239_s7, 3  ;;  %v404_v12 = vshrl.u32 %v403_v11, 7 }
  0x17   : > { %s245_s11 = scalar_lea.vmem %s877_s0, %s580_s8  ;;  %s253_s21 = scalar_lea.vmem %s878_s1, %s561_s12 }
  0x18   : > { %v255_v2 = vld [vmem:[%s245_s11] sm:$0xff]  ;;  %v256_v6 = vld [vmem:[%s245_s11 + $0x8] sm:$0xff]  ;;  %vm408_vm2 = vcmp.lt.s32.totalorder %v404_v12, 1  ;;  %v416_v20 = vadd.s32 4294967295, %v404_v12  ;;  %vm426_vm3 = vcmp.lt.s32.totalorder %v404_v12, 7  ;;  %s455_s8 = scalar_lea.hbm %s881_s4, %s581_s30  ;;  %vm432_vm5 = vcmp.ge.s32.totalorder %v404_v12, 7 }
  0x19   : > { %v350_v7 = vld [vmem:[%s253_s21] sm:$0xff]  ;;  %s458_s10 = sshll.u32 %s455_s8, 4  ;;  %s660_s21 = scalar_lea.hbm %s881_s4, 32  ;;  %s459_s10 = int_to_ptr.hbm [resolvable:$true] %s458_s10 }
  0x1a   : > { %vm417_vm4 = vcmp.lt.s32.totalorder %v416_v20, 0  ;;  %s654_s11 = sshra.s32 %s459_s10, 4  ;;  %s655_s11 = int_to_ptr.hbm [resolvable:$true] %s654_s11 }
  0x1b   : > { %s656_s12 = scalar_lea.hbm %s655_s11, 16  ;;  %p661_p1 = scmp.lt.s32.totalorder %s655_s11, %s881_s4 }
  0x1c   : > { %v266_v3 = vld.sshfl [vmem:[#allocation1 + $0x10] sm:$0xff pattern:$0x75316420]  ;;  %p657_p12 = scmp.ne.s32.totalorder %s655_s11, %s656_s12  ;;  %p662_p2 = scmp.lt.s32.totalorder %s660_s21, %s656_s12 }
  0x1d   : > { %568 = vmatpush.msk.msra.mxu2 %vm274_vm0, %v266_v3  ;;  %353 = vst [vmem:[#allocation1 + $0x10] ss:$2 sm:$0xff] %v258_v0  ;;  %v264_v4 = vld.sshfl [vmem:[#allocation1] sm:$0xff pattern:$0x75316420] }
  0x1e   : > { %569 = vmatmul.msk.f32.vlgmr.msra.gmra.mxu2 %vm267_vm1, %v255_v2  ;;  %562 = vmatpush.msk.msra.mxu0 %vm274_vm0, %v264_v4  ;;  %v265_v5 = vld.sshfl [vmem:[#allocation1 + $0x8] sm:$0xff pattern:$0x75316420]  ;;  %p658_p13 = pnand %p657_p12, %p787_p4  ;;  %p663_p3 = por %p662_p2, %p661_p1 }
  0x1f   : > { %563 = vmatmul.msk.f32.vlgmr.msra.gmra.mxu0 %vm267_vm1, %v255_v2  ;;  %565 = vmatpush.msk.msra.mxu1 %vm274_vm0, %v265_v5  ;;  %351 = vst [vmem:[#allocation1] ss:$2 sm:$0xff] %v257_v1 }
  0x20   : > { %566 = vmatmul.msk.f32.vlgmr.msra.gmra.mxu1 %vm267_vm1, %v255_v2  ;;  %p659_p0 = pneg %p658_p13 }
  0x22   : > { %p664_p5 = pnand %p663_p3, %p659_p0 }
  0x24   : > { %v355_v9 = vld.sshfl [vmem:[#allocation1 + $0x10] sm:$0xff pattern:$0x75316420] }
  0x26   : > { %v354_v8 = vld.sshfl [vmem:[#allocation1] sm:$0xff pattern:$0x75316420]  ;;  %570 = vmatmul.msk.f32.gmra.mxu2 %vm267_vm1, %v256_v6 }
  0x27   : > { %571 = vmatpush.msk.msra.mxu3 %vm274_vm0, %v354_v8  ;;  %564 = vmatmul.msk.f32.gmra.mxu0 %vm267_vm1, %v256_v6 }
  0x28   : > { %572 = vmatmul.msk.f32.vlgmr.msra.gmra.mxu3 %vm267_vm1, %v350_v7  ;;  %567 = vmatmul.msk.f32.gmra.mxu1 %vm267_vm1, %v256_v6 }
  0x29   : > { %573 = vmatpush.msk.msrb.mxu3 %vm274_vm0, %v355_v9 }
  0x30   : > { %574 = vmatmul.msk.f32.vlgmr.msrb.gmra.mxu3 %vm267_vm1, %v350_v7 }
  0x9c   : > { %v298_v10 = vpop.f32.mrf.mxu0 }
  0x9d   : > { %v406_v14 = vrot.slane %v298_v10, 7  ;;  %v321_v18 = vpop.f32.mrf.mxu1 }
  0xa1   : > { %v344_v13 = vpop.f32.mrf.mxu2 }
  0xa2   : > { %v424_v21 = vrot.slane %v344_v13, 1 }
  0xa4   : > { %v301_v15 = vpop.f32.mrf.mxu0 }
  0xa5   : > { %v407_v17 = vrot.slane %v301_v15, 7  ;;  %v324_v34 = vpop.f32.mrf.mxu1 }
  0xa7   : > { %v410_v19 = vsel %vm408_vm2, %v407_v17, %v406_v14  ;;  %v409_v29 = vsel %vm408_vm2, %v406_v14, %v407_v17 }
  0xa8   : > { %v414_v22 = vadd.f32 %v639_v16, %v410_v19  ;;  %v415_v33 = vadd.f32 %v639_v16, %v409_v29 }
  0xa9   : > { %v347_v23 = vpop.f32.mrf.mxu2 }
  0xaa   : > { %v425_v24 = vrot.slane %v347_v23, 1  ;;  %v422_v25 = vadd.f32 %v414_v22, %v321_v18  ;;  %v423_v35 = vadd.f32 %v415_v33, %v324_v34 }
  0xab   : > { %v380_v26 = vpop.f32.mrf.mxu3 }
  0xac   : > { %v427_v27 = vsel %vm426_vm3, %v424_v21, %v425_v24  ;;  %v418_v28 = vsub.f32 %v380_v26, %v410_v19  ;;  %v428_v37 = vsel %vm426_vm3, %v425_v24, %v424_v21 }
  0xad   : > { %v429_v30 = vadd.f32 %v427_v27, %v422_v25  ;;  %v430_v40 = vadd.f32 %v428_v37, %v423_v35 }
  0xae   : > { %v421_v31 = vsel %vm417_vm4, %v418_v28, 0.0 }
  0xaf   : > { %v437_v32 = vadd.f32 %v429_v30, %v421_v31 }
  0xb1   : > { %439 = vst [vmem:[%s236_s5] sm:$0xff] %v437_v32 }
  0xb3   : > { %v400_v36 = vpop.f32.mrf.mxu3 }
  0xb4   : > { %v431_v38 = vrot.slane %v400_v36, 2 }
  0xb6   : > { %v433_v39 = vsub.f32 %v431_v38, %v428_v37 }
  0xb8   : > { %v436_v41 = vsel %vm432_vm5, %v433_v39, 0.0 }
  0xb9   : > { %v438_v42 = vadd.f32 %v436_v41, %v430_v40 }
  0xbb   : > { %440 = vst [vmem:[%s236_s5 + $0x8] sm:$0xff] %v438_v42 }
  0xbc   : > { %667 = shalt.err (!%p664_p5)
}
  0xbd   : > { %s720_s26 = smov 128   ;;  %s721_s29 = smov 8  }
  0xbe   : > { %582 = dma.vmem_to_hbm [thread:$0]  (%p787_p4), %s457_s9, 256, %s459_s10, %s442_s18, %s720_s26, %s720_s26, %s721_s29  }
  0xbf PF: > { %p588_p6 = scmp.ge.s32.totalorder %s718_s20, 2  ;;  %s473_s30 = sand.u32 1, %s698_s15  }
  0xc0   : > { %s474_s5 = scalar_lea.sflag [#allocation3], %s473_s30 }
  0xc1   : > { %p585_p7 = pnand %p588_p6, %p794_p8 }
  0xc3   : > { %p586_p9 = pneg %p585_p7 }
  0xc5   : > { %693 = dma.done.wait (%p586_p9), %s474_s5, 256  }
  0xc6   : > { %695 = vsyncadd (%p586_p9), %s474_s5, 4294967040  ;;  %s17_s20 = sadd.s32 1, %s718_s20   ;;  %s884_s15 = smov %s702_s16 }
  0xc7   : > { %p14_p10 = scmp.ge.s32.totalorder %s17_s20, 4   ;;  %s885_s16 = smov %s706_s17 }
  0xc8   : > { %s886_s17 = smov %s800_s28  ;;  %s887_s18 = smov %s714_s19 }
  0xc9   : > { %s888_s19 = smov %s890_s23  ;;  %16 = sbr.rel (!%p14_p10) target bundleno = 4 (0x4), region = 76 }
  0xce   :  { %480 = vsyncpa [#allocation3], 1 }
  0xcf   :  { %482 = vsyncpa [#allocation3 + $0x1], 1 }

</bundles_post_ra>
